<compile_context>
chip_gen: v6e
topology: v6e:2x2x1
jax: 0.10.0
libtpu: 0.0.40
codegen_flags: <defaults>
</compile_context>

<pallas_src>
import math

import jax
import jax.numpy as jnp
from jax.experimental import pallas as pl
from jax.experimental.pallas import tpu as pltpu

_LANE = 128


def _modality_add_kernel(x_ref, m_ref, o_ref):
    # x_ref: (TILE_R, TILE_C), m_ref: (1, TILE_C), o_ref: (TILE_R, TILE_C)
    # Pure VPU broadcast-add; the (1, TILE_C) modality block broadcasts over
    # sublanes.  Addition promotes (e.g. bf16 + f32 -> f32) like the reference.
    o_ref[...] = (x_ref[...] + m_ref[...]).astype(o_ref.dtype)


def _sublane_pack(itemsize):
    # f32 vreg packs 8 sublanes, bf16 16, int8/fp8 32.
    return {4: 8, 2: 16, 1: 32}.get(itemsize, 8)


def _device_budgets():
    """Return (target block bytes, scoped-VMEM cap) sized to the chip."""
    try:
        vmem_phys = int(pltpu.get_tpu_info().vmem_capacity_bytes)
    except Exception:
        vmem_phys = 128 << 20
    if vmem_phys <= (64 << 20):
        # v7x-class: fast HBM, only 64 MiB VMEM -> 8 MiB blocks, ~44 MiB cap.
        return 8 << 20, 44 << 20
    # v5e/v6e: 128 MiB physical VMEM; raise the scoped cap generously.
    return 8 << 20, 56 << 20


def _choose_tiles(n_rows, width, itemsize, sublane, target_bytes, min_row_blocks=4):
    # Columns: keep the full width unless even a single sublane-slab blows the
    # per-block byte budget (very large embed dims), then block in 128s.
    if width <= _LANE or width * itemsize * sublane <= target_bytes:
        tile_cols = width
    else:
        tile_cols = max(_LANE, (target_bytes // (sublane * itemsize * _LANE)) * _LANE)
        tile_cols = min(tile_cols, width)
    # Rows: fill the byte budget, rounded to the sublane pack.
    tile_rows = max(sublane, target_bytes // max(1, tile_cols * itemsize))
    tile_rows = max(sublane, (tile_rows // sublane) * sublane)
    # Guarantee >= min_row_blocks row blocks (when the row count allows it) so
    # double-buffering engages and both v7x TensorCores get work.
    if n_rows > sublane:
        cap = pl.cdiv(n_rows, min_row_blocks)
        cap = max(sublane, ((cap + sublane - 1) // sublane) * sublane)
        tile_rows = min(tile_rows, cap)
    if tile_rows >= n_rows:
        tile_rows = n_rows  # full-dim block is always legal
    return int(tile_rows), int(tile_cols)


def _add_2d(x2, m2, out_dtype, itemsize, sublane, target_bytes, vmem_cap, alias):
    """x2: (rows, width); m2: (1, width). Returns x2 + m2 (row broadcast)."""
    rows, width = x2.shape
    tile_rows, tile_cols = _choose_tiles(rows, width, itemsize, sublane, target_bytes)
    grid = (pl.cdiv(width, tile_cols), pl.cdiv(rows, tile_rows))  # cols outer, rows inner

    block_bytes = tile_rows * tile_cols * itemsize
    # x + out double-buffered (+ tiny modality block) with some slack.
    vmem_limit = int(min(vmem_cap, max(32 << 20, 5 * block_bytes)))

    kwargs = {}
    if alias and x2.dtype == out_dtype:
        # Only alias when the caller explicitly donates x (otherwise XLA would
        # insert a defensive full copy, doubling HBM traffic).
        kwargs["input_output_aliases"] = {0: 0}

    return pl.pallas_call(
        _modality_add_kernel,
        out_shape=jax.ShapeDtypeStruct((rows, width), out_dtype),
        grid_spec=pltpu.PrefetchScalarGridSpec(
            num_scalar_prefetch=0,
            grid=grid,
            in_specs=[
                pl.BlockSpec((tile_rows, tile_cols), lambda j, i: (i, j)),
                # Constant along the inner (row) axis: the modality block stays
                # resident across the whole row sweep of a column band.
                pl.BlockSpec((1, tile_cols), lambda j, i: (0, j)),
            ],
            out_specs=pl.BlockSpec((tile_rows, tile_cols), lambda j, i: (i, j)),
        ),
        compiler_params=pltpu.CompilerParams(
            dimension_semantics=("parallel", "parallel"),
            vmem_limit_bytes=vmem_limit,
        ),
        **kwargs,
    )(x2, m2)


def modality_encoder(x, modality_encoding, *, alias_input=False, target_block_bytes=None):
    """x: (S, B, D); modality_encoding: (1, 1, D). Returns x + modality (broadcast)."""
    S, B, D = x.shape
    out_dtype = jnp.result_type(x.dtype, modality_encoding.dtype)
    itemsize = max(jnp.dtype(x.dtype).itemsize, jnp.dtype(out_dtype).itemsize)
    sublane = max(_sublane_pack(jnp.dtype(x.dtype).itemsize),
                  _sublane_pack(jnp.dtype(out_dtype).itemsize))

    default_blk, vmem_cap = _device_budgets()
    if target_block_bytes is None:
        target_block_bytes = default_blk

    n_rows = S * B
    m = modality_encoding.reshape(1, D)
    x2d = x.reshape(n_rows, D)

    # Lane-dense repack: fold k D-chunks per row so the lane dim is a multiple
    # of 128 (unmasked vector stores).  k == 1 when D is already 128-aligned.
    k = 1 if D % _LANE == 0 else _LANE // math.gcd(D, _LANE)
    main_rows = (n_rows // k) * k
    rem_rows = n_rows - main_rows

    outs = []
    if main_rows > 0:
        width = k * D
        xm = x2d if main_rows == n_rows else x2d[:main_rows]
        xm = xm.reshape(main_rows // k, width)
        mm = jnp.tile(m, (1, k)) if k > 1 else m
        om = _add_2d(xm, mm, out_dtype, itemsize, sublane,
                     target_block_bytes, vmem_cap, alias_input)
        outs.append(om.reshape(main_rows, D))
    if rem_rows > 0:
        # Tiny remainder (< k <= 128 rows): narrow-lane masked stores are fine.
        orem = _add_2d(x2d[main_rows:], m, out_dtype, itemsize, sublane,
                       target_block_bytes, vmem_cap, False)
        outs.append(orem)

    out2d = outs[0] if len(outs) == 1 else jnp.concatenate(outs, axis=0)
    return out2d.reshape(S, B, D)


def _check(key, S, B, D, dtype=jnp.float32, m_dtype=None):
    m_dtype = dtype if m_dtype is None else m_dtype
    k_x, k_m = jax.random.split(key)
    x = jax.random.normal(k_x, (S, B, D), dtype=dtype)
    modality = jax.random.normal(k_m, (1, 1, D), dtype=m_dtype)
    out = jax.block_until_ready(modality_encoder(x, modality))
    ref = x + jnp.broadcast_to(modality, x.shape)
    assert out.shape == x.shape, f"shape mismatch ({S},{B},{D})"
    assert out.dtype == ref.dtype, f"dtype mismatch ({S},{B},{D})"
    assert jnp.allclose(out, ref, atol=1e-6, rtol=1e-6), f"value mismatch ({S},{B},{D})"


if __name__ == "__main__":
    key = jax.random.PRNGKey(0)
    k0, k1, k2 = jax.random.split(key, 3)

    # Small demo shape (seq=8, batch=2, embed_dim=32): lane-dense repack path
    # (D=32 -> 4 chunks per 128-wide row), rows divide k.
    _check(k0, S=8, B=2, D=32)

    # Default module embed_dim (768) with a row count that does not divide the
    # tile: exercises cdiv / partial-row-block masking.
    _check(k1, S=5, B=3, D=768)

    # D=32 with n_rows not divisible by k=4: main repacked path + tiny
    # remainder fallback call.
    _check(k2, S=3, B=3, D=32)

    print("KERNEL_OK")
</pallas_src>

<mosaic_0001>
module attributes {stable_mosaic.version = 11 : i64} {
  func.func @_modality_add_kernel(%arg0: i32, %arg1: i32, %arg2: memref<4x128xf32, #tpu.memory_space<vmem>>, %arg3: memref<1x128xf32, #tpu.memory_space<vmem>>, %arg4: memref<4x128xf32, #tpu.memory_space<vmem>>) attributes {dimension_semantics = [#tpu.dimension_semantics<parallel>, #tpu.dimension_semantics<parallel>], iteration_bounds = array<i64: 1, 1>, scalar_prefetch = 0 : i64, scratch_operands = 0 : i64, tpu.core_type = #tpu.core_type<tc>, window_params = [{transform_indices = @transform_0, window_bounds = array<i64: 4, 128>}, {transform_indices = @transform_1, window_bounds = array<i64: 1, 128>}, {transform_indices = @transform_2, window_bounds = array<i64: 4, 128>}]} {
    %c0 = arith.constant 0 : index
    %c0_0 = arith.constant 0 : index
    %0 = vector.load %arg2[%c0, %c0_0] : memref<4x128xf32, #tpu.memory_space<vmem>>, vector<4x128xf32>
    %c0_1 = arith.constant 0 : index
    %c0_2 = arith.constant 0 : index
    %1 = vector.load %arg3[%c0_1, %c0_2] : memref<1x128xf32, #tpu.memory_space<vmem>>, vector<1x128xf32>
    %2 = vector.broadcast %1 : vector<1x128xf32> to vector<4x128xf32>
    %3 = arith.addf %0, %2 : vector<4x128xf32>
    %c0_3 = arith.constant 0 : index
    %c0_4 = arith.constant 0 : index
    %4 = vector.load %arg4[%c0_3, %c0_4] : memref<4x128xf32, #tpu.memory_space<vmem>>, vector<4x128xf32>
    tpu.vector_store %arg4[%c0_3, %c0_4], %3 {strides = array<i32>} : memref<4x128xf32, #tpu.memory_space<vmem>>, vector<4x128xf32>,
    return
  }
  func.func @transform_0(%arg0: i32, %arg1: i32) -> (i32, i32) {
    %c0_i32 = arith.constant 0 : i32
    return %arg1, %arg0 : i32, i32
  }
  func.func @transform_1(%arg0: i32, %arg1: i32) -> (i32, i32) {
    %c0_i32 = arith.constant 0 : i32
    %c0_i32_0 = arith.constant 0 : i32
    return %c0_i32, %arg0 : i32, i32
  }
  func.func @transform_2(%arg0: i32, %arg1: i32) -> (i32, i32) {
    %c0_i32 = arith.constant 0 : i32
    return %arg1, %arg0 : i32, i32
  }
}

</mosaic_0001>

<bundles_post_ra>
// kernel: tpu_custom_call.1
= control target key start
LH: loop header
LB: loop body
LE: loop exit
PB: predicated region body
PF: predicated region fallthrough
CT: control target
= control target key end

     0   :  { %7 = vsyncpa [#allocation3], 0  ;;  %s122_s0 = inlined_call_operand.hbm [shape: f32[4,128], index: 0, kind: input, shape index: {}]   ;;  %s123_s1 = inlined_call_operand.vmem [shape: f32[1,128], index: 1, kind: input, shape index: {}]   ;;  %s124_s2 = inlined_call_operand.hbm [shape: f32[4,128], index: 2, kind: output, shape index: {}]  }
   0x1   :  { %8 = vsyncpa [#allocation4], 0  ;;  %s96_s9 = smov [#allocation2]  }
   0x2   :  { %s15_s10 = sshll.u32 %s96_s9, 4  ;;  %s16_s10 = int_to_ptr.vmem [resolvable:$true] %s15_s10 }
   0x3   :  { %s60_s11 = scalar_lea.vmem %s16_s10, 64  ;;  %p65_p1 = scmp.lt.s32.totalorder %s16_s10, %s16_s10 }
   0x4   :  { %p61_p0 = scmp.ne.s32.totalorder %s16_s10, %s60_s11  ;;  %p66_p2 = scmp.lt.s32.totalorder %s60_s11, %s60_s11 }
   0x6   :  { %p67_p3 = por %p66_p2, %p65_p1 }
   0x8   :  { %p68_p4 = pnand %p67_p3, %p61_p0 }
   0xa   :  { %71 = shalt.err (!%p68_p4)
}
   0xb   :  { %18 = dma.hbm_to_vmem [thread:$0]  %s122_s0, 64, %s16_s10, [#allocation3]  }
   0xc   :  { %92 = dma.done.wait [#allocation3], 64  }
   0xd   :  { %93 = vsyncadd [#allocation3], 4294967232  ;;  %s97_s14 = smov [#allocation5]   ;;  %v24_v0 = vld [vmem:[#allocation2] sm:$0xf] }
   0xe   :  { %s40_s15 = sshll.u32 %s97_s14, 4  ;;  %v49_v1 = vld [vmem:[%s123_s1] ss:$0 sm:$0xff]  ;;  %s41_s15 = int_to_ptr.vmem [resolvable:$true] %s40_s15 }
   0xf   :  { %v32_v2 = vadd.f32 %v49_v1, %v24_v0  ;;  %s72_s18 = scalar_lea.vmem %s41_s15, 64  ;;  %p77_p6 = scmp.lt.s32.totalorder %s41_s15, %s41_s15 }
  0x10   :  { %p73_p5 = scmp.ne.s32.totalorder %s41_s15, %s72_s18  ;;  %p78_p7 = scmp.lt.s32.totalorder %s72_s18, %s72_s18 }
  0x11   :  { %33 = vst [vmem:[#allocation5] sm:$0xf] %v32_v2 }
  0x12   :  { %p79_p8 = por %p78_p7, %p77_p6 }
  0x14   :  { %p80_p9 = pnand %p79_p8, %p73_p5 }
  0x16   :  { %83 = shalt.err (!%p80_p9)
}
  0x17   :  { %43 = dma.vmem_to_hbm [thread:$0]  %s41_s15, 64, %s124_s2, [#allocation4]  }
  0x18   :  { %94 = dma.done.wait [#allocation4], 64  }
  0x19   :  { %95 = vsyncadd [#allocation4], 4294967232 }
  0x1a   :  { %47 = vsyncpa [#allocation3], 1 }
  0x1b   :  { %48 = vsyncpa [#allocation4], 1 }

</bundles_post_ra>
